<compile_context>
chip_gen: v7x
topology: tpu7x:2x2x1
jax: 0.10.0
libtpu: 0.0.40
codegen_flags: <defaults>
</compile_context>

<pallas_src>
import jax
import jax.numpy as jnp
from jax import lax
from jax.experimental import pallas as pl
from jax.experimental.pallas import tpu as pltpu


def _round_up(a, m):
    return ((a + m - 1) // m) * m


# ---------------------------------------------------------------------------
# Primary path: x resident in VMEM, in-kernel row gather.
# ---------------------------------------------------------------------------
def _make_resident_kernel(n1, tb):
    def kernel(idx_ref, x_ref, out_ref):
        # idx_ref : SMEM int32[n2p]  scalar-prefetched col-0 gather indices
        # x_ref   : VMEM [n1, d]     whole coarse feature tensor (loaded once)
        # out_ref : VMEM [tb, d]     current output block
        base = pl.program_id(0) * tb

        def body(r, carry):
            src = idx_ref[base + r]
            valid = src < n1                       # index n1 == zero shadow row
            row = x_ref[pl.ds(jnp.minimum(src, n1 - 1), 1), :]
            out_ref[pl.ds(r, 1), :] = jnp.where(valid, row, jnp.zeros_like(row))
            return carry

        lax.fori_loop(0, tb, body, None)

    return kernel


# ---------------------------------------------------------------------------
# Fallback path: x stays in HBM, per-row DMA gather straight into out_ref.
# ---------------------------------------------------------------------------
_NSEM = 16  # number of row-DMAs kept in flight (round-robin semaphore pool)


def _make_hbm_kernel(tb):
    def kernel(idx_ref, x_hbm, out_ref, sem):
        # idx_ref : SMEM int32[n2p]
        # x_hbm   : HBM [n1+1, d] (features + zero shadow row), memory_space=ANY
        # out_ref : VMEM [tb, d]
        # sem     : DMA semaphore pool (_NSEM,)
        base = pl.program_id(0) * tb

        def row_copy(r):
            # Same descriptor for start and wait (same src / dst / sem).
            return pltpu.make_async_copy(
                x_hbm.at[idx_ref[base + r]], out_ref.at[r], sem.at[r % _NSEM])

        for r in range(tb):                 # static unroll (tb is small here)
            if r >= _NSEM:
                row_copy(r - _NSEM).wait()  # free this semaphore slot first
            row_copy(r).start()
        for r in range(max(tb - _NSEM, 0), tb):
            row_copy(r).wait()

    return kernel


_RESIDENT_VMEM_BUDGET = 48 << 20   # conservative: fits v7x's 64 MiB physical VMEM


def nearest_upsample(x, upsample_inds, *, force_hbm=False):
    """Pallas closest_pool(x, inds): out[i] = x_pad[inds[i, 0]], x_pad[n1] = 0."""
    n1, d = x.shape
    n2 = upsample_inds.shape[0]
    idx0 = upsample_inds[:, 0].astype(jnp.int32)
    itemsize = jnp.dtype(x.dtype).itemsize

    # VMEM footprint of a [rows, d] block, including (sublane, lane) tile padding.
    def vmem_bytes(rows):
        return _round_up(rows, 16) * _round_up(d, 128) * itemsize

    # Large output tiles (perf review: per-grid-step overhead dominates tiny tiles).
    tb = min(256, _round_up(max(n2, 1), 8))
    n2p = _round_up(max(n2, 1), tb)
    idx_p = jnp.pad(idx0, (0, n2p - n2), constant_values=n1)  # pads hit shadow row

    budget = 2 * vmem_bytes(n1) + 2 * vmem_bytes(tb) + (4 << 20)
    use_resident = (not force_hbm) and budget <= _RESIDENT_VMEM_BUDGET

    if use_resident:
        out = pl.pallas_call(
            _make_resident_kernel(n1, tb),
            out_shape=jax.ShapeDtypeStruct((n2p, d), x.dtype),
            grid_spec=pltpu.PrefetchScalarGridSpec(
                num_scalar_prefetch=1,            # idx_p -> SMEM
                grid=(n2p // tb,),
                # x: one full-array block, constant block index -> DMA'd to VMEM once.
                in_specs=[pl.BlockSpec((n1, d), lambda i, idx: (0, 0))],
                out_specs=pl.BlockSpec((tb, d), lambda i, idx: (i, 0)),
            ),
            compiler_params=pltpu.CompilerParams(
                dimension_semantics=("parallel",),   # independent blocks; v7x 2 TCs
                vmem_limit_bytes=int(min(max(budget, 32 << 20), 56 << 20)),
            ),
        )(idx_p, x)
        return out[:n2]

    # ---- Fallback: x too large for VMEM -> HBM row-gather DMAs ----
    tb = min(32, tb)
    n2p = _round_up(max(n2, 1), tb)
    idx_p = jnp.pad(idx0, (0, n2p - n2), constant_values=n1)
    # TODO(synk): the shadow-row concat rewrites x in HBM once per call; it could
    # be removed by clamping the DMA source row and masking shadow rows in-kernel.
    x_padded = jnp.concatenate([x, jnp.zeros((1, d), x.dtype)], axis=0)

    out = pl.pallas_call(
        _make_hbm_kernel(tb),
        out_shape=jax.ShapeDtypeStruct((n2p, d), x.dtype),
        grid_spec=pltpu.PrefetchScalarGridSpec(
            num_scalar_prefetch=1,
            grid=(n2p // tb,),
            in_specs=[pl.BlockSpec(memory_space=pl.ANY)],   # x stays in HBM
            out_specs=pl.BlockSpec((tb, d), lambda i, idx: (i, 0)),
            scratch_shapes=[pltpu.SemaphoreType.DMA((_NSEM,))],
        ),
        compiler_params=pltpu.CompilerParams(
            dimension_semantics=("parallel",)),
    )(idx_p, x_padded)
    return out[:n2]


class NearestUpsampleBlock:
    """Parameter-free block; forward == closest_pool(x, batch['upsamples'][layer_ind-1])."""

    def __init__(self, layer_ind):
        self.layer_ind = layer_ind

    def __call__(self, x, batch):
        return nearest_upsample(x, batch['upsamples'][self.layer_ind - 1])


if __name__ == "__main__":
    key = jax.random.PRNGKey(0)
    k_x, k_idx = jax.random.split(key)

    # Small shapes: n1 coarse points upsampled to n2 fine points, d features.
    n1, d = 12, 64
    n2, max_num = 20, 5

    x = jax.random.normal(k_x, (n1, d), dtype=jnp.float32)
    # Neighbor indices in [0, n1]; value n1 is the shadow index (-> zeros).
    upsamples = jax.random.randint(k_idx, (n2, max_num), 0, n1 + 1,
                                   dtype=jnp.int32)
    batch = {'upsamples': [upsamples]}   # layer_ind = 1 -> upsamples[0]

    # Reference (plain JAX, mirrors the PyTorch closest_pool semantics).
    x_padded_ref = jnp.concatenate([x, jnp.zeros((1, d), x.dtype)], axis=0)
    ref = x_padded_ref[upsamples[:, 0]]

    # Primary (VMEM-resident) path.
    block = NearestUpsampleBlock(layer_ind=1)
    out = jax.block_until_ready(block(x, batch))
    assert out.shape == (n2, d)
    assert jnp.array_equal(out, ref)

    # Exercise the HBM-gather fallback path (used when x does not fit VMEM).
    out_hbm = jax.block_until_ready(nearest_upsample(x, upsamples, force_hbm=True))
    assert jnp.array_equal(out_hbm, ref)

    print("KERNEL_OK")
</pallas_src>

<mosaic_0001>
module attributes {stable_mosaic.version = 11 : i64} {
  func.func @kernel(%arg0: i32, %arg1: memref<24xi32, #tpu.memory_space<smem>>, %arg2: memref<12x64xf32, #tpu.memory_space<vmem>>, %arg3: memref<24x64xf32, #tpu.memory_space<vmem>>) attributes {dimension_semantics = [#tpu.dimension_semantics<parallel>], iteration_bounds = array<i64: 1>, scalar_prefetch = 1 : i64, scratch_operands = 0 : i64, tpu.core_type = #tpu.core_type<tc>, window_params = [{pipeline_mode = #tpu.pipeline_mode<synchronous>, transform_indices = @transform_0, window_bounds = array<i64: 12, 64>}, {transform_indices = @transform_1, window_bounds = array<i64: 24, 64>}]} {
    %c24_i32 = arith.constant 24 : i32
    %0 = arith.muli %arg0, %c24_i32 : i32
    %c0_i32 = arith.constant 0 : i32
    %c24_i32_0 = arith.constant 24 : i32
    %1 = arith.addi %c0_i32, %c24_i32_0 : i32
    %c1_i32 = arith.constant 1 : i32
    scf.for %arg4 = %c0_i32 to %1 step %c1_i32  : i32 {
      %2 = arith.addi %0, %arg4 : i32
      %3 = arith.index_cast %2 : i32 to index
      %4 = memref.load %arg1[%3] : memref<24xi32, #tpu.memory_space<smem>>
      %c12_i32 = arith.constant 12 : i32
      %5 = arith.cmpi slt, %4, %c12_i32 : i32
      %c11_i32 = arith.constant 11 : i32
      %6 = arith.minsi %4, %c11_i32 : i32
      %7 = arith.index_cast %6 : i32 to index
      %c0 = arith.constant 0 : index
      %8 = vector.load %arg2[%7, %c0] : memref<12x64xf32, #tpu.memory_space<vmem>>, vector<1x64xf32>
      %cst = arith.constant 0.000000e+00 : f32
      %9 = vector.broadcast %cst : f32 to vector<1x64xf32>
      %10 = arith.select %5, %8, %9 : vector<1x64xf32>
      %11 = arith.index_cast %arg4 : i32 to index
      %c0_2 = arith.constant 0 : index
      %12 = vector.load %arg3[%11, %c0_2] : memref<24x64xf32, #tpu.memory_space<vmem>>, vector<1x64xf32>
      tpu.vector_store %arg3[%11, %c0_2], %10 {strides = array<i32>} : memref<24x64xf32, #tpu.memory_space<vmem>>, vector<1x64xf32>,
    }
    %c24_i32_1 = arith.constant 24 : i32
    return
  }
  func.func @transform_0(%arg0: i32, %arg1: memref<24xi32, #tpu.memory_space<smem>>) -> (i32, i32) {
    %c0_i32 = arith.constant 0 : i32
    %c0_i32_0 = arith.constant 0 : i32
    %c0_i32_1 = arith.constant 0 : i32
    return %c0_i32, %c0_i32_0 : i32, i32
  }
  func.func @transform_1(%arg0: i32, %arg1: memref<24xi32, #tpu.memory_space<smem>>) -> (i32, i32) {
    %c0_i32 = arith.constant 0 : i32
    %c0_i32_0 = arith.constant 0 : i32
    return %arg0, %c0_i32 : i32, i32
  }
}

</mosaic_0001>

<bundles_post_ra>
// kernel: tpu_custom_call.1
= control target key start
LH: loop header
LB: loop body
LE: loop exit
PB: predicated region body
PF: predicated region fallthrough
CT: control target
= control target key end

     0   :  { %s216_s0 = inlined_call_operand.hbm [shape: s32[24], index: 0, kind: input, shape index: {}]   ;;  %s217_s1 = inlined_call_operand.hbm [shape: f32[12,64], index: 1, kind: input, shape index: {}]   ;;  %s218_s2 = inlined_call_operand.hbm [shape: f32[24,64], index: 2, kind: output, shape index: {}]  }
   0x1   :  { %s86_s11 = scalar_lea.hbm %s216_s0, 16 }
   0x2   :  { %p87_p0 = scmp.ne.s32.totalorder %s216_s0, %s86_s11  ;;  %p90_p1 = scmp.lt.u32.totalorder %s86_s11, %s216_s0 }
   0x4   :  { %p92_p2 = pnand %p90_p1, %p87_p0 }
   0x6   :  { %95 = shalt.err (!%p92_p2)  }
   0x7   :  { %s154_s16 = smov [#allocation3]  }
   0x8   :  { %8 = dma.hbm_to_smem %s216_s0, 16, %s154_s16, [#allocation2] }
   0x9   :  { %144 = dma.done.wait [#allocation2], 16 }
   0xa   :  { %145 = vsyncadd [#allocation2], 4294967280 }
   0xb   :  { %10 = sfence }
   0xc   :  { %11 = vsyncpa [#allocation5], 0 }
   0xd   :  { %12 = vsyncpa [#allocation6], 0  ;;  %s155_s19 = smov [#allocation4]   ;;  %s96_s23 = scalar_lea.hbm %s217_s1, 256 }
   0xe   :  { %s18_s20 = sshll.u32 %s155_s19, 4  ;;  %p97_p3 = scmp.ne.s32.totalorder %s217_s1, %s96_s23  ;;  %s19_s20 = int_to_ptr.vmem [resolvable:$true] %s18_s20 }
   0xf   :  { %p100_p4 = scmp.lt.u32.totalorder %s96_s23, %s217_s1 }
  0x11   :  { %p102_p5 = pnand %p100_p4, %p97_p3 }
  0x13   :  { %105 = shalt.err (!%p102_p5)
}
  0x14   :  { %s106_s0 = scalar_lea.vmem %s19_s20, 256  ;;  %p111_p7 = scmp.lt.s32.totalorder %s19_s20, %s19_s20 }
  0x15   :  { %p107_p6 = scmp.ne.s32.totalorder %s19_s20, %s106_s0  ;;  %p112_p8 = scmp.lt.s32.totalorder %s106_s0, %s106_s0 }
  0x17   :  { %p113_p9 = por %p112_p8, %p111_p7 }
  0x19   :  { %p114_p10 = pnand %p113_p9, %p107_p6 }
  0x1b   :  { %117 = shalt.err (!%p114_p10)
}
  0x1c   :  { %s156_s28 = smov 128   ;;  %s157_s29 = smov 8  }
  0x1d   :  { %24 = dma.hbm_to_vmem [thread:$0]  %s217_s1, 256, %s19_s20, [#allocation5], %s156_s28, %s156_s28, %s157_s29  }
  0x1e   :  { %146 = dma.done.wait [#allocation5], 256  }
  0x1f   :  { %147 = vsyncadd [#allocation5], 4294967040  ;;  %s150_s4 = smov 0  }
  0x20 LB: > { %s36_s5 = sld [smem:[#allocation3 + %s152_s4]]  ;;  %vm47_vm0 = vcmask 516096   ;;  %s46_s8 = scalar_lea.vmem [#allocation7], %s152_s4  ;;  %s152_s4 = sphi %s150_s4, %s34_s4  }
  0x21   : > { %s34_s4 = sadd.s32 1, %s152_s4  }
  0x22   : > { %p31_p13 = scmp.ge.s32.totalorder %s34_s4, 24  }
  0x23   :  { %s158_s1 = smov (%p31_p13), [#allocation7]  }
  0x24   :  { %s54_s9 = sshll.u32 (%p31_p13), %s158_s1, 4  ;;  %s55_s9 = int_to_ptr.vmem [resolvable:$true] %s54_s9 }
  0x25   :  { %s118_s10 = scalar_lea.vmem (%p31_p13), %s55_s9, 384  ;;  %p123_p1 = scmp.lt.s32.totalorder (%p31_p13), %s55_s9, %s55_s9 }
  0x26   : > { %p37_p11 = scmp.lt.s32.totalorder %s36_s5, 12  ;;  %p38_p12 = scmp.lt.s32.totalorder %s36_s5, 11 }
  0x27   :  { %p119_p0 = scmp.ne.s32.totalorder (%p31_p13), %s55_s9, %s118_s10  ;;  %p124_p2 = scmp.lt.s32.totalorder (%p31_p13), %s118_s10, %s118_s10 }
  0x28   : > { %s220_s5 = smov (!%p38_p12, %s36_s5), 11  ;;  %33 = sbr.rel (!%p31_p13) target bundleno = 32 (0x20), region = 37 }
  0x29   : > { %s42_s6 = scalar_select %p37_p11, 1, 0 }
  0x2a   : > { %s40_s7 = scalar_lea.vmem [#allocation4], %s220_s5  ;;  %p125_p3 = por (%p31_p13), %p124_p2, %p123_p1 }
  0x2b   : > { %v41_v0 = vld [vmem:[%s40_s7] sm:$0x1]  ;;  %v43_v1 = vstv %s42_s6 }
  0x2c   : > { %vm44_vm1 = vcmp.eq.s32.totalorder %v43_v1, 1  ;;  %p126_p4 = pnand (%p31_p13), %p125_p3, %p119_p0 }
  0x2d   : > { %v45_v2 = vsel %vm44_vm1, %v41_v0, 0.0 }
  0x2e   : > { %48 = vst.msk [vmem:[%s46_s8] sm:$0x1] %vm47_vm0, %v45_v2 }
  0x2f   :  { %129 = shalt.err (!%p126_p4)
}
  0x30   :  { %s130_s13 = scalar_lea.hbm %s218_s2, 384 }
  0x31   :  { %p131_p5 = scmp.ne.s32.totalorder %s218_s2, %s130_s13  ;;  %p134_p6 = scmp.lt.u32.totalorder %s130_s13, %s218_s2 }
  0x33   :  { %p136_p7 = pnand %p134_p6, %p131_p5 }
  0x35   :  { %139 = shalt.err (!%p136_p7)
}
  0x36   :  { %60 = dma.vmem_to_hbm [thread:$0]  %s55_s9, 384, %s218_s2, [#allocation6], %s156_s28, %s156_s28, %s157_s29  }
  0x37   :  { %148 = dma.done.wait [#allocation6], 384  }
  0x38   :  { %149 = vsyncadd [#allocation6], 4294966912 }
  0x39   :  { %64 = vsyncpa [#allocation5], 1 }
  0x3a   :  { %65 = vsyncpa [#allocation6], 1 }

</bundles_post_ra>
